<compile_context>
chip_gen: v6e
topology: v6e:2x2x1
jax: 0.10.0
libtpu: 0.0.40
codegen_flags: <defaults>
</compile_context>

<pallas_src>
import jax
import jax.numpy as jnp
import numpy as np
from jax.experimental import pallas as pl
from jax.experimental.pallas import tpu as pltpu

LANE = 128  # vreg lane width


def _round_up(x, m):
    return ((x + m - 1) // m) * m


def _fused_mlp_kernel(x_ref, w_ref, b_ref, o_ref):
    """One batch tile through the whole (BN-folded) MLP.

    x_ref: [tm, f_in]         bf16 input activations (real feature width)
    w_ref: [L, F_PAD, F_PAD]  bf16 stacked, zero-padded, BN-folded weights
    b_ref: [L, 1, F_PAD]      f32  stacked, zero-padded, BN-folded biases
    o_ref: [tm, f_out]        f32  reconstruction (real feature width)
    """
    n_layers = w_ref.shape[0]
    f_in = x_ref.shape[1]
    f_out = o_ref.shape[1]

    # Layer 0: contract over the real K = f_in (static slice of the slab;
    # f_in = 16 aligns with the bf16 sublane packing of 16).
    h = jnp.dot(x_ref[...], w_ref[0, :f_in, :],
                preferred_element_type=jnp.float32) + b_ref[0]
    h = jnp.maximum(h, 0.0)  # ReLU (Dropout is identity in eval mode)

    # Remaining layers stay lane-padded to 128: padded weight rows/cols and
    # biases are zero and relu(0)=0, so padded lanes never contribute.
    for i in range(1, n_layers):
        h = jnp.dot(h.astype(jnp.bfloat16), w_ref[i],
                    preferred_element_type=jnp.float32) + b_ref[i]
        h = jnp.maximum(h, 0.0)

    # Only the real output features go back to HBM (narrow store beats
    # streaming a 128-lane padded slab at these memory-bound shapes).
    o_ref[...] = h[:, :f_out].astype(o_ref.dtype)


def gaussian_dae_forward(x, weights, biases, *, tm=1024):
    """Fused DAE reconstruction forward pass (eval-mode semantics).

    x:        [N, F_in] float
    weights:  list of [in_i, out_i] float32 (BN already folded in)
    biases:   list of [1, out_i]    float32 (BN already folded in)
    returns:  [N, F_out] float32 reconstruction
    """
    N, f_in = x.shape
    f_out = weights[-1].shape[1]
    L = len(weights)

    # Feature dims are lane-padded to 128 only inside the VMEM-resident
    # parameter slabs; HBM activations keep their real width.
    f_pad = _round_up(max([f_in, f_out] + [max(w.shape) for w in weights]),
                      LANE)

    w_stack = np.zeros((L, f_pad, f_pad), np.float32)
    b_stack = np.zeros((L, 1, f_pad), np.float32)
    for i, (w, b) in enumerate(zip(weights, biases)):
        din, dout = w.shape
        w_stack[i, :din, :dout] = np.asarray(w, np.float32)
        b_stack[i, 0, :dout] = np.asarray(b, np.float32).reshape(-1)
    # NOTE: bf16 cast happens after the BN fold; with trained running stats
    # (small running_var) re-validate tolerance.  Exact at init stats (rv=1).
    w_stack = jnp.asarray(w_stack, jnp.bfloat16)  # MXU fast path
    b_stack = jnp.asarray(b_stack, jnp.float32)

    # Batch tiling: multiple of 8 (sublane rule) and at least two grid steps
    # whenever possible so v7x's two TensorCores both get work.
    n8 = _round_up(N, 8)
    tm = max(8, (int(tm) // 8) * 8)
    if n8 > 8:
        tm = min(tm, _round_up((n8 + 1) // 2, 8))
    n_pad = _round_up(N, tm)

    # Stream the input as bf16 (the kernel rounds matmul operands to bf16
    # anyway, so this is precision-free); pad batch rows only if needed.
    x_b = x.astype(jnp.bfloat16)
    if n_pad != N:
        x_b = jnp.pad(x_b, ((0, n_pad - N), (0, 0)))

    grid = (n_pad // tm,)
    flops = 2 * n_pad * (f_in * f_pad + (L - 1) * f_pad * f_pad)
    bytes_accessed = (n_pad * f_in * 2 + w_stack.size * 2 + b_stack.size * 4
                      + n_pad * f_out * 4)

    out = pl.pallas_call(
        _fused_mlp_kernel,
        grid=grid,
        in_specs=[
            # Activations: real feature width, streamed per batch tile.
            pl.BlockSpec((tm, f_in), lambda i: (i, 0)),
            # Grid-invariant parameter slabs: fetched once, VMEM-resident.
            pl.BlockSpec((L, f_pad, f_pad), lambda i: (0, 0, 0)),
            pl.BlockSpec((L, 1, f_pad), lambda i: (0, 0, 0)),
        ],
        out_specs=pl.BlockSpec((tm, f_out), lambda i: (i, 0)),
        out_shape=jax.ShapeDtypeStruct((n_pad, f_out), jnp.float32),
        compiler_params=pltpu.CompilerParams(
            dimension_semantics=("parallel",)),
        cost_estimate=pl.CostEstimate(
            flops=flops, transcendentals=0, bytes_accessed=bytes_accessed),
    )(x_b, w_stack, b_stack)

    return out if n_pad == N else out[:N]


def make_params(key, dims, bn_eps=1e-5):
    """PyTorch-style Linear init + per-channel eval-mode BatchNorm1d fold."""
    weights, biases = [], []
    for din, dout in zip(dims[:-1], dims[1:]):
        key, kw, kb = jax.random.split(key, 3)
        bound = 1.0 / np.sqrt(din)
        W = jax.random.uniform(kw, (dout, din), jnp.float32, -bound, bound)
        b = jax.random.uniform(kb, (dout,), jnp.float32, -bound, bound)
        # BatchNorm1d at init (eval mode): rm=0, rv=1, gamma=1, beta=0.
        gamma = jnp.ones((dout,), jnp.float32)
        beta = jnp.zeros((dout,), jnp.float32)
        rm = jnp.zeros((dout,), jnp.float32)
        rv = jnp.ones((dout,), jnp.float32)
        # Per-channel fold: y = (x @ W.T + b - rm) * s + beta, s = gamma/sqrt(rv+eps)
        s = gamma / jnp.sqrt(rv + bn_eps)
        weights.append((W.T * s[None, :]).astype(jnp.float32))          # [in, out]
        biases.append(((b - rm) * s + beta).reshape(1, dout).astype(jnp.float32))
    return key, weights, biases


def ref_forward(x, weights, biases):
    """Pure-JAX reference mirroring the kernel's bf16 operand rounding."""
    h = x.astype(jnp.float32)
    for w, b in zip(weights, biases):
        h = jnp.dot(h.astype(jnp.bfloat16).astype(jnp.float32),
                    w.astype(jnp.bfloat16).astype(jnp.float32),
                    preferred_element_type=jnp.float32) + b
        h = jnp.maximum(h, 0.0)
    return h


if __name__ == "__main__":
    # Small shapes consistent with the module:
    #   len_cat=4, len_num=12  -> post_encoding_input_size = 16
    #   encoder_hidden_list=[32, 32], bottleneck_size=8, decoder_hidden_list=[32, 32]
    N = 256
    len_cat, len_num = 4, 12
    in_dim = len_cat + len_num
    encoder_hidden_list = [32, 32]
    decoder_hidden_list = [32, 32]
    bottleneck_size = 8

    # Layer dims: encoder_calibrate, encoder_list, bottleneck,
    #             decoder_calibrate, decoder_list, reconstruct.
    dims = ([in_dim] + encoder_hidden_list + [bottleneck_size]
            + decoder_hidden_list + [in_dim])

    key = jax.random.PRNGKey(0)
    key, weights, biases = make_params(key, dims)
    key, kx = jax.random.split(key)
    x = jax.random.normal(kx, (N, in_dim), jnp.float32)

    out = gaussian_dae_forward(x, weights, biases)  # grid of 2 batch tiles
    out = jax.block_until_ready(out)
    expected = ref_forward(x, weights, biases)
    np.testing.assert_allclose(np.asarray(out), np.asarray(expected),
                               rtol=1e-3, atol=1e-3)

    # Ragged batch + non-multiple-of-8 caller tm exercises the tile rounding
    # and batch-padding paths.
    key, kx2 = jax.random.split(key)
    x2 = jax.random.normal(kx2, (100, in_dim), jnp.float32)
    out2 = jax.block_until_ready(
        gaussian_dae_forward(x2, weights, biases, tm=100))
    np.testing.assert_allclose(np.asarray(out2),
                               np.asarray(ref_forward(x2, weights, biases)),
                               rtol=1e-3, atol=1e-3)

    # TODO(synk): forward_gamma / compute_energy / gmm_estimation_layer
    # (cosine-similarity features, softmax head, matrix inverse + slogdet)
    # are not part of forward() and are left unimplemented.
    print("KERNEL_OK")
</pallas_src>

<mosaic_0001>
module attributes {stable_mosaic.version = 11 : i64} {
  func.func @_fused_mlp_kernel(%arg0: i32, %arg1: memref<128x16xbf16, #tpu.memory_space<vmem>>, %arg2: memref<6x128x128xbf16, #tpu.memory_space<vmem>>, %arg3: memref<6x1x128xf32, #tpu.memory_space<vmem>>, %arg4: memref<128x16xf32, #tpu.memory_space<vmem>>) attributes {dimension_semantics = [#tpu.dimension_semantics<parallel>], iteration_bounds = array<i64: 2>, scalar_prefetch = 0 : i64, scratch_operands = 0 : i64, tpu.core_type = #tpu.core_type<tc>, window_params = [{transform_indices = @transform_0, window_bounds = array<i64: 128, 16>}, {pipeline_mode = #tpu.pipeline_mode<synchronous>, transform_indices = @transform_1, window_bounds = array<i64: 6, 128, 128>}, {pipeline_mode = #tpu.pipeline_mode<synchronous>, transform_indices = @transform_2, window_bounds = array<i64: 6, 1, 128>}, {transform_indices = @transform_3, window_bounds = array<i64: 128, 16>}]} {
    %c0 = arith.constant 0 : index
    %c0_0 = arith.constant 0 : index
    %0 = vector.load %arg1[%c0, %c0_0] : memref<128x16xbf16, #tpu.memory_space<vmem>>, vector<128x16xbf16>
    %c0_1 = arith.constant 0 : index
    %c0_2 = arith.constant 0 : index
    %c0_3 = arith.constant 0 : index
    %1 = vector.load %arg2[%c0_1, %c0_2, %c0_3] : memref<6x128x128xbf16, #tpu.memory_space<vmem>>, vector<1x16x128xbf16>
    %2 = vector.shape_cast %1 : vector<1x16x128xbf16> to vector<16x128xbf16>
    %cst = arith.constant dense<0.000000e+00> : vector<128x128xf32>
    %3 = tpu.matmul %0, %2, %cst {dimension_numbers = #tpu.dot_dimension_numbers<[1], [0], [0], [1], [0, 0, 1, 1], [], []>} : vector<128x16xbf16>, vector<16x128xbf16>, vector<128x128xf32> -> vector<128x128xf32>
    %c0_4 = arith.constant 0 : index
    %c0_5 = arith.constant 0 : index
    %c0_6 = arith.constant 0 : index
    %4 = vector.load %arg3[%c0_4, %c0_5, %c0_6] : memref<6x1x128xf32, #tpu.memory_space<vmem>>, vector<1x1x128xf32>
    %5 = vector.shape_cast %4 : vector<1x1x128xf32> to vector<1x128xf32>
    %6 = vector.broadcast %5 : vector<1x128xf32> to vector<128x128xf32>
    %7 = arith.addf %3, %6 : vector<128x128xf32>
    %cst_7 = arith.constant 0.000000e+00 : f32
    %8 = vector.broadcast %cst_7 : f32 to vector<128x128xf32>
    %9 = arith.maximumf %7, %8 : vector<128x128xf32>
    %10 = arith.truncf %9 : vector<128x128xf32> to vector<128x128xbf16>
    %c1 = arith.constant 1 : index
    %c0_8 = arith.constant 0 : index
    %c0_9 = arith.constant 0 : index
    %11 = vector.load %arg2[%c1, %c0_8, %c0_9] : memref<6x128x128xbf16, #tpu.memory_space<vmem>>, vector<1x128x128xbf16>
    %12 = vector.shape_cast %11 : vector<1x128x128xbf16> to vector<128x128xbf16>
    %cst_10 = arith.constant dense<0.000000e+00> : vector<128x128xf32>
    %13 = tpu.matmul %10, %12, %cst_10 {dimension_numbers = #tpu.dot_dimension_numbers<[1], [0], [0], [1], [0, 0, 1, 1], [], []>} : vector<128x128xbf16>, vector<128x128xbf16>, vector<128x128xf32> -> vector<128x128xf32>
    %c1_11 = arith.constant 1 : index
    %c0_12 = arith.constant 0 : index
    %c0_13 = arith.constant 0 : index
    %14 = vector.load %arg3[%c1_11, %c0_12, %c0_13] : memref<6x1x128xf32, #tpu.memory_space<vmem>>, vector<1x1x128xf32>
    %15 = vector.shape_cast %14 : vector<1x1x128xf32> to vector<1x128xf32>
    %16 = vector.broadcast %15 : vector<1x128xf32> to vector<128x128xf32>
    %17 = arith.addf %13, %16 : vector<128x128xf32>
    %cst_14 = arith.constant 0.000000e+00 : f32
    %18 = vector.broadcast %cst_14 : f32 to vector<128x128xf32>
    %19 = arith.maximumf %17, %18 : vector<128x128xf32>
    %20 = arith.truncf %19 : vector<128x128xf32> to vector<128x128xbf16>
    %c2 = arith.constant 2 : index
    %c0_15 = arith.constant 0 : index
    %c0_16 = arith.constant 0 : index
    %21 = vector.load %arg2[%c2, %c0_15, %c0_16] : memref<6x128x128xbf16, #tpu.memory_space<vmem>>, vector<1x128x128xbf16>
    %22 = vector.shape_cast %21 : vector<1x128x128xbf16> to vector<128x128xbf16>
    %cst_17 = arith.constant dense<0.000000e+00> : vector<128x128xf32>
    %23 = tpu.matmul %20, %22, %cst_17 {dimension_numbers = #tpu.dot_dimension_numbers<[1], [0], [0], [1], [0, 0, 1, 1], [], []>} : vector<128x128xbf16>, vector<128x128xbf16>, vector<128x128xf32> -> vector<128x128xf32>
    %c2_18 = arith.constant 2 : index
    %c0_19 = arith.constant 0 : index
    %c0_20 = arith.constant 0 : index
    %24 = vector.load %arg3[%c2_18, %c0_19, %c0_20] : memref<6x1x128xf32, #tpu.memory_space<vmem>>, vector<1x1x128xf32>
    %25 = vector.shape_cast %24 : vector<1x1x128xf32> to vector<1x128xf32>
    %26 = vector.broadcast %25 : vector<1x128xf32> to vector<128x128xf32>
    %27 = arith.addf %23, %26 : vector<128x128xf32>
    %cst_21 = arith.constant 0.000000e+00 : f32
    %28 = vector.broadcast %cst_21 : f32 to vector<128x128xf32>
    %29 = arith.maximumf %27, %28 : vector<128x128xf32>
    %30 = arith.truncf %29 : vector<128x128xf32> to vector<128x128xbf16>
    %c3 = arith.constant 3 : index
    %c0_22 = arith.constant 0 : index
    %c0_23 = arith.constant 0 : index
    %31 = vector.load %arg2[%c3, %c0_22, %c0_23] : memref<6x128x128xbf16, #tpu.memory_space<vmem>>, vector<1x128x128xbf16>
    %32 = vector.shape_cast %31 : vector<1x128x128xbf16> to vector<128x128xbf16>
    %cst_24 = arith.constant dense<0.000000e+00> : vector<128x128xf32>
    %33 = tpu.matmul %30, %32, %cst_24 {dimension_numbers = #tpu.dot_dimension_numbers<[1], [0], [0], [1], [0, 0, 1, 1], [], []>} : vector<128x128xbf16>, vector<128x128xbf16>, vector<128x128xf32> -> vector<128x128xf32>
    %c3_25 = arith.constant 3 : index
    %c0_26 = arith.constant 0 : index
    %c0_27 = arith.constant 0 : index
    %34 = vector.load %arg3[%c3_25, %c0_26, %c0_27] : memref<6x1x128xf32, #tpu.memory_space<vmem>>, vector<1x1x128xf32>
    %35 = vector.shape_cast %34 : vector<1x1x128xf32> to vector<1x128xf32>
    %36 = vector.broadcast %35 : vector<1x128xf32> to vector<128x128xf32>
    %37 = arith.addf %33, %36 : vector<128x128xf32>
    %cst_28 = arith.constant 0.000000e+00 : f32
    %38 = vector.broadcast %cst_28 : f32 to vector<128x128xf32>
    %39 = arith.maximumf %37, %38 : vector<128x128xf32>
    %40 = arith.truncf %39 : vector<128x128xf32> to vector<128x128xbf16>
    %c4 = arith.constant 4 : index
    %c0_29 = arith.constant 0 : index
    %c0_30 = arith.constant 0 : index
    %41 = vector.load %arg2[%c4, %c0_29, %c0_30] : memref<6x128x128xbf16, #tpu.memory_space<vmem>>, vector<1x128x128xbf16>
    %42 = vector.shape_cast %41 : vector<1x128x128xbf16> to vector<128x128xbf16>
    %cst_31 = arith.constant dense<0.000000e+00> : vector<128x128xf32>
    %43 = tpu.matmul %40, %42, %cst_31 {dimension_numbers = #tpu.dot_dimension_numbers<[1], [0], [0], [1], [0, 0, 1, 1], [], []>} : vector<128x128xbf16>, vector<128x128xbf16>, vector<128x128xf32> -> vector<128x128xf32>
    %c4_32 = arith.constant 4 : index
    %c0_33 = arith.constant 0 : index
    %c0_34 = arith.constant 0 : index
    %44 = vector.load %arg3[%c4_32, %c0_33, %c0_34] : memref<6x1x128xf32, #tpu.memory_space<vmem>>, vector<1x1x128xf32>
    %45 = vector.shape_cast %44 : vector<1x1x128xf32> to vector<1x128xf32>
    %46 = vector.broadcast %45 : vector<1x128xf32> to vector<128x128xf32>
    %47 = arith.addf %43, %46 : vector<128x128xf32>
    %cst_35 = arith.constant 0.000000e+00 : f32
    %48 = vector.broadcast %cst_35 : f32 to vector<128x128xf32>
    %49 = arith.maximumf %47, %48 : vector<128x128xf32>
    %50 = arith.truncf %49 : vector<128x128xf32> to vector<128x128xbf16>
    %c5 = arith.constant 5 : index
    %c0_36 = arith.constant 0 : index
    %c0_37 = arith.constant 0 : index
    %51 = vector.load %arg2[%c5, %c0_36, %c0_37] : memref<6x128x128xbf16, #tpu.memory_space<vmem>>, vector<1x128x128xbf16>
    %52 = vector.shape_cast %51 : vector<1x128x128xbf16> to vector<128x128xbf16>
    %cst_38 = arith.constant dense<0.000000e+00> : vector<128x128xf32>
    %53 = tpu.matmul %50, %52, %cst_38 {dimension_numbers = #tpu.dot_dimension_numbers<[1], [0], [0], [1], [0, 0, 1, 1], [], []>} : vector<128x128xbf16>, vector<128x128xbf16>, vector<128x128xf32> -> vector<128x128xf32>
    %c5_39 = arith.constant 5 : index
    %c0_40 = arith.constant 0 : index
    %c0_41 = arith.constant 0 : index
    %54 = vector.load %arg3[%c5_39, %c0_40, %c0_41] : memref<6x1x128xf32, #tpu.memory_space<vmem>>, vector<1x1x128xf32>
    %55 = vector.shape_cast %54 : vector<1x1x128xf32> to vector<1x128xf32>
    %56 = vector.broadcast %55 : vector<1x128xf32> to vector<128x128xf32>
    %57 = arith.addf %53, %56 : vector<128x128xf32>
    %cst_42 = arith.constant 0.000000e+00 : f32
    %58 = vector.broadcast %cst_42 : f32 to vector<128x128xf32>
    %59 = arith.maximumf %57, %58 : vector<128x128xf32>
    %60 = vector.extract_strided_slice %59 {offsets = [0, 0], sizes = [128, 16], strides = [1, 1]} : vector<128x128xf32> to vector<128x16xf32>
    %c0_43 = arith.constant 0 : index
    %c0_44 = arith.constant 0 : index
    %61 = vector.load %arg4[%c0_43, %c0_44] : memref<128x16xf32, #tpu.memory_space<vmem>>, vector<128x16xf32>
    tpu.vector_store %arg4[%c0_43, %c0_44], %60 {strides = array<i32>} : memref<128x16xf32, #tpu.memory_space<vmem>>, vector<128x16xf32>,
    return
  }
  func.func @transform_0(%arg0: i32) -> (i32, i32) {
    %c0_i32 = arith.constant 0 : i32
    %c0_i32_0 = arith.constant 0 : i32
    return %arg0, %c0_i32 : i32, i32
  }
  func.func @transform_1(%arg0: i32) -> (i32, i32, i32) {
    %c0_i32 = arith.constant 0 : i32
    %c0_i32_0 = arith.constant 0 : i32
    %c0_i32_1 = arith.constant 0 : i32
    %c0_i32_2 = arith.constant 0 : i32
    return %c0_i32, %c0_i32_0, %c0_i32_1 : i32, i32, i32
  }
  func.func @transform_2(%arg0: i32) -> (i32, i32, i32) {
    %c0_i32 = arith.constant 0 : i32
    %c0_i32_0 = arith.constant 0 : i32
    %c0_i32_1 = arith.constant 0 : i32
    %c0_i32_2 = arith.constant 0 : i32
    return %c0_i32, %c0_i32_0, %c0_i32_1 : i32, i32, i32
  }
  func.func @transform_3(%arg0: i32) -> (i32, i32) {
    %c0_i32 = arith.constant 0 : i32
    %c0_i32_0 = arith.constant 0 : i32
    return %arg0, %c0_i32 : i32, i32
  }
}

</mosaic_0001>

<bundles_post_ra>
// kernel: tpu_custom_call.1
= control target key start
LH: loop header
LB: loop body
LE: loop exit
PB: predicated region body
PF: predicated region fallthrough
CT: control target
= control target key end

     0   :  { %8 = vsyncpa [#allocation3], 0  ;;  %s1948_s12 = smov 0   ;;  %s2084_s0 = inlined_call_operand.vmem [shape: bf16[256,16], index: 0, kind: input, shape index: {}]   ;;  %s2085_s1 = inlined_call_operand.hbm [shape: bf16[6,128,128], index: 1, kind: input, shape index: {}]   ;;  %s2086_s2 = inlined_call_operand.vmem [shape: f32[6,1,128], index: 2, kind: input, shape index: {}]   ;;  %s2087_s3 = inlined_call_operand.vmem [shape: f32[256,16], index: 3, kind: output, shape index: {}]  }
   0x1 LB: > { %s1453_s13 = sadd.s32 4294967295, %s1923_s12   ;;  %p1455_p0 = scmp.ge.s32.totalorder %s1923_s12, 1  ;;  %s1923_s12 = sphi %s1948_s12, %s14_s12  }
   0x2   : > { %p113_p1 = scmp.lt.s32.totalorder %s1923_s12, 3  ;;  %s1925_s14 = smov [#allocation2]  }
   0x3   : > { %s125_s15 = sshll.u32 %s1925_s14, 4  ;;  %p1960_p3 = scmp.eq.s32.totalorder %s1453_s13, 0  ;;  %s126_s15 = int_to_ptr.vmem [resolvable:$true] %s125_s15 }
   0x4   : > { %p1956_p2 = pnand %p1455_p0, %p113_p1  ;;  %s1898_s18 = scalar_lea.vmem %s126_s15, 6144 }
   0x5   : > { %p1899_p7 = scmp.ne.s32.totalorder %s126_s15, %s1898_s18  ;;  %p1906_p10 = scmp.lt.s32.totalorder %s126_s15, %s126_s15 }
   0x6   : > { %p1821_p4 = pneg %p1956_p2  ;;  %p1907_p11 = scmp.lt.s32.totalorder %s1898_s18, %s1898_s18 }
   0x8   : > { %p1822_p5 = pnand %p1960_p3, %p1821_p4  ;;  %p1908_p12 = por %p1907_p11, %p1906_p10 }
   0xa   : > { %p1889_p6 = pneg %p1822_p5 }
   0xc   : > { %p1901_p8 = pnand %p1899_p7, %p1889_p6 }
   0xe   : > { %p1902_p9 = pneg %p1901_p8 }
  0x10   : > { %p1909_p13 = pnand %p1908_p12, %p1902_p9 }
  0x12   : > { %1912 = shalt.err (!%p1909_p13)
}
  0x13   : > { %s1926_s19 = smov 64   ;;  %s1927_s20 = smov 4  }
  0x14   : > { %1824 = dma.hbm_to_vmem [thread:$0]  (!%p1822_p5), %s2085_s1, 6144, %s126_s15, [#allocation3], %s1926_s19, %s1926_s19, %s1927_s20  }
  0x15   : > { %153 = sbr.rel (%p1956_p2) target bundleno = 1293 (0x50d), region = 32 }
  0x1a   : > { %1918 = dma.done.wait (%p1960_p3), [#allocation3], 6144  }
  0x1b   : > { %1920 = vsyncadd (%p1960_p3), [#allocation3], 4294961152  ;;  %s1460_s23 = sshll.u32 %s1453_s13, 4  ;;  %v1838_v0 = vld [vmem:[#allocation2] sm:$0xff]   ;;  %vm261_vm0 = vcmask 130048   ;;  %v1847_v5 = vld [vmem:[#allocation2 + $0x78] sm:$0xff]  }
  0x1c   : > { %p178_p0 = scmp.lt.s32.totalorder %s1460_s23, 31  ;;  %1623 = vmatprep.subr.bf16.mxu0 %v1838_v0  ;;  %v1848_v6 = vld [vmem:[#allocation2 + $0x70] sm:$0xff]   ;;  %1641 = vmatprep.subr.bf16.mxu1 %v1847_v5  ;;  %v1849_v8 = vld [vmem:[#allocation2 + $0x68] sm:$0xff]   ;;  %v1850_v9 = vld [vmem:[#allocation2 + $0x60] sm:$0xff]  }
  0x1d   : > { %1624 = vmatpush3.bf16.msra.mxu0 %v1838_v0  ;;  %1642 = vmatpush3.bf16.msra.mxu1 %v1847_v5  ;;  %v1851_v12 = vld [vmem:[#allocation2 + $0x58] sm:$0xff]   ;;  %v1852_v14 = vld [vmem:[#allocation2 + $0x50] sm:$0xff]   ;;  %v1853_v15 = vld [vmem:[#allocation2 + $0x48] sm:$0xff]  }
  0x1e   : > { %s2091_s23 = smov (!%p178_p0, %s1460_s23), 31  ;;  %1643 = vmatprep.subr.bf16.mxu1 %v1848_v6  ;;  %v1854_v16 = vld [vmem:[#allocation2 + $0x40] sm:$0xff]   ;;  %v1855_v17 = vld [vmem:[#allocation2 + $0xb8] sm:$0xff]   ;;  %v1856_v18 = vld [vmem:[#allocation2 + $0xb0] sm:$0xff]  }
  0x1f   : > { %s1461_s24 = sshll.u32 %s2091_s23, 2  ;;  %1673 = vmatprep.subr.bf16.mxu0 %v1855_v17  ;;  %v1857_v19 = vld [vmem:[#allocation2 + $0xa8] sm:$0xff]   ;;  %v1858_v20 = vld [vmem:[#allocation2 + $0xa0] sm:$0xff]   ;;  %v1859_v21 = vld [vmem:[#allocation2 + $0x98] sm:$0xff]   ;;  %s1463_s14 = sshll.u32 %s2091_s23, 3 }
  0x20   : > { %s1983_s27 = scalar_lea.vmem %s2084_s0, %s1461_s24  ;;  %v1464_v24 = vld [vmem:[%s2086_s2] ss:$0 sm:$0xff]  ;;  %s2032_s17 = scalar_lea.vmem %s2087_s3, %s1463_s14 }
  0x21   : > { %v1839_v1 = vld [vmem:[%s1983_s27] sm:$0xff]   ;;  %v1840_v2 = vld [vmem:[%s1983_s27 + $0x8] sm:$0xff]   ;;  %v1841_v3 = vld [vmem:[%s1983_s27 + $0x10] sm:$0xff]   ;;  %1644 = vmatpush3.bf16.msra.mxu1 %v1848_v6 }
  0x22   : > { %1625 = vmatprep.mubr.msk.bf16.mxu0 %vm261_vm0, %v1839_v1  ;;  %v1842_v4 = vld [vmem:[%s1983_s27 + $0x18] sm:$0xff]   ;;  %v1843_v7 = vld [vmem:[%s1983_s27 + $0x20] sm:$0xff]   ;;  %v1844_v10 = vld [vmem:[%s1983_s27 + $0x28] sm:$0xff]   ;;  %1645 = vmatprep.subr.bf16.mxu1 %v1849_v8 }
  0x23   : > { %1626 = vmatmul.mubr.msk.bf16.vlgmr.msra.gmra.mxu0 %vm261_vm0, %v1840_v2  ;;  %v1845_v11 = vld [vmem:[%s1983_s27 + $0x30] sm:$0xff]   ;;  %v1846_v13 = vld [vmem:[%s1983_s27 + $0x38] sm:$0xff]  }
  0x24   : > { %1629 = vmatprep.mubr.msk.bf16.mxu0 %vm261_vm0, %v1841_v3  ;;  %1674 = vmatpush3.bf16.msra.mxu0 %v1855_v17  ;;  %v1862_v17 = vld [vmem:[#allocation2 + $0x80] sm:$0xff]  }
  0x25   : > { %1646 = vmatpush3.bf16.msra.mxu1 %v1849_v8  ;;  %1675 = vmatprep.subr.bf16.mxu0 %v1856_v18 }
  0x26   : > { %1647 = vmatprep.subr.bf16.mxu1 %v1850_v9 }
  0x28   : > { %1676 = vmatpush3.bf16.msra.mxu0 %v1856_v18  ;;  %v1863_v18 = vld [vmem:[#allocation2 + $0xf8] sm:$0xff]  }
  0x29   : > { %1648 = vmatpush3.bf16.msra.mxu1 %v1850_v9  ;;  %1677 = vmatprep.subr.bf16.mxu0 %v1857_v19 }
  0x2a   : > { %1649 = vmatprep.subr.bf16.mxu1 %v1851_v12 }
  0x2b   : > { %1630 = vmatmul.mubr.msk.bf16.gmra.mxu0 %vm261_vm0, %v1842_v4 }
  0x2c   : > { %1633 = vmatprep.mubr.msk.bf16.mxu0 %vm261_vm0, %v1843_v7  ;;  %1678 = vmatpush3.bf16.msra.mxu0 %v1857_v19  ;;  %v1864_v19 = vld [vmem:[#allocation2 + $0xf0] sm:$0xff]  }
  0x2d   : > { %1650 = vmatpush3.bf16.msra.mxu1 %v1851_v12  ;;  %1679 = vmatprep.subr.bf16.mxu0 %v1858_v20 }
  0x2e   : > { %1651 = vmatprep.subr.bf16.mxu1 %v1852_v14 }
  0x30   : > { %1680 = vmatpush3.bf16.msra.mxu0 %v1858_v20  ;;  %v1865_v20 = vld [vmem:[#allocation2 + $0xe8] sm:$0xff]  }
  0x31   : > { %1652 = vmatpush3.bf16.msra.mxu1 %v1852_v14  ;;  %1681 = vmatprep.subr.bf16.mxu0 %v1859_v21 }
  0x32   : > { %1653 = vmatprep.subr.bf16.mxu1 %v1853_v15 }
  0x33   : > { %1634 = vmatmul.mubr.msk.bf16.gmra.mxu0 %vm261_vm0, %v1844_v10 }
  0x34   : > { %1637 = vmatprep.mubr.msk.bf16.mxu0 %vm261_vm0, %v1845_v11  ;;  %1682 = vmatpush3.bf16.msra.mxu0 %v1859_v21  ;;  %v1866_v21 = vld [vmem:[#allocation2 + $0xe0] sm:$0xff]  }
  0x35   : > { %1654 = vmatpush3.bf16.msra.mxu1 %v1853_v15  ;;  %v1860_v15 = vld [vmem:[#allocation2 + $0x90] sm:$0xff]  }
  0x36   : > { %1655 = vmatprep.subr.bf16.mxu1 %v1854_v16  ;;  %1683 = vmatprep.subr.bf16.mxu0 %v1860_v15 }
  0x38   : > { %1684 = vmatpush3.bf16.msra.mxu0 %v1860_v15 }
  0x39   : > { %1656 = vmatpush3.bf16.msra.mxu1 %v1854_v16  ;;  %v1861_v16 = vld [vmem:[#allocation2 + $0x88] sm:$0xff]  }
  0x3a   : > { %1685 = vmatprep.subr.bf16.mxu0 %v1861_v16  ;;  %1705 = vmatprep.subr.bf16.mxu1 %v1863_v18 }
  0x3b   : > { %1638 = vmatmul.mubr.msk.bf16.gmra.mxu0 %vm261_vm0, %v1846_v13 }
  0x3c   : > { %1686 = vmatpush3.bf16.msra.mxu0 %v1861_v16  ;;  %v1868_v16 = vld [vmem:[#allocation2 + $0xd0] sm:$0xff]  }
  0x3d   : > { %1687 = vmatprep.subr.bf16.mxu0 %v1862_v17 }
  0x40   : > { %1688 = vmatpush3.bf16.msra.mxu0 %v1862_v17  ;;  %v1869_v17 = vld [vmem:[#allocation2 + $0xc8] sm:$0xff]  }
  0xe3   : > { %v1627_v22 = vpop.f32.mrf.mxu0 }
  0xe4   : > { %v329_v28 = vadd.f32 %v1627_v22, %v1464_v24  ;;  %v1867_v22 = vld [vmem:[#allocation2 + $0xd8] sm:$0xff]  }
  0xe5   : > { %v320_v23 = vpop.f32.mrf.mxu0 }
  0xe6   : > { %v321_v26 = vadd.f32 %v1464_v24, %v320_v23  ;;  %v385_v35 = vmax.f32 %v329_v28, 0.0 }
  0xe7   : > { %v1628_v25 = vpop.f32.mrf.mxu0 }
  0xe8   : > { %v332_v27 = vadd.f32 %v1628_v25, %v1464_v24  ;;  %v383_v33 = vmax.f32 %v321_v26, 0.0  ;;  %v1483_v25 = vld [vmem:[%s2086_s2 + $0x1] ss:$0 sm:$0xff] }
  0xe9   : > { %v323_v29 = vpop.f32.mrf.mxu0 }
  0xea   : > { %v324_v30 = vadd.f32 %v1464_v24, %v323_v29  ;;  %v386_v31 = vmax.f32 %v332_v27, 0.0 }
  0xeb   : > { %v1631_v32 = vpop.f32.mrf.mxu0 }
  0xec   : > { %v384_v34 = vmax.f32 %v324_v30, 0.0  ;;  %v400_v38 = vpack.c.bf16 %v386_v31, %v385_v35  ;;  %v345_v42 = vadd.f32 %v1631_v32, %v1464_v24 }
  0xed   : > { %v336_v36 = vpop.f32.mrf.mxu0 }
  0xee   : > { %v399_v37 = vpack.c.bf16 %v384_v34, %v383_v33  ;;  %v337_v40 = vadd.f32 %v1464_v24, %v336_v36  ;;  %v389_v49 = vmax.f32 %v345_v42, 0.0 }
  0xef   : > { %v1632_v39 = vpop.f32.mrf.mxu0 }
  0xf0   : > { %v348_v41 = vadd.f32 %v1632_v39, %v1464_v24  ;;  %1657 = vmatprep.mubr.bf16.mxu1 %v399_v37  ;;  %v387_v47 = vmax.f32 %v337_v40, 0.0 }
  0xf1   : > { %v339_v43 = vpop.f32.mrf.mxu0  ;;  %1658 = vmatmul.mubr.bf16.vlgmr.msra.gmra.mxu1 %v400_v38 }
  0xf2   : > { %v340_v44 = vadd.f32 %v1464_v24, %v339_v43  ;;  %v390_v45 = vmax.f32 %v348_v41, 0.0  ;;  %1706 = vmatpush3.bf16.msra.mxu1 %v1863_v18  ;;  %v1870_v18 = vld [vmem:[#allocation2 + $0xc0] sm:$0xff]  }
  0xf3   : > { %v1635_v46 = vpop.f32.mrf.mxu0  ;;  %1707 = vmatprep.subr.bf16.mxu1 %v1864_v19 }
  0xf4   : > { %v388_v48 = vmax.f32 %v340_v44, 0.0  ;;  %v402_v52 = vpack.c.bf16 %v390_v45, %v389_v49  ;;  %v361_v56 = vadd.f32 %v1635_v46, %v1464_v24 }
  0xf5   : > { %v352_v50 = vpop.f32.mrf.mxu0 }
  0xf6   : > { %v401_v51 = vpack.c.bf16 %v388_v48, %v387_v47  ;;  %v353_v54 = vadd.f32 %v1464_v24, %v352_v50  ;;  %v393_v63 = vmax.f32 %v361_v56, 0.0  ;;  %1708 = vmatpush3.bf16.msra.mxu1 %v1864_v19  ;;  %v1871_v19 = vld [vmem:[#allocation2 + $0x138] sm:$0xff]  }
  0xf7   : > { %v1636_v53 = vpop.f32.mrf.mxu0  ;;  %1709 = vmatprep.subr.bf16.mxu1 %v1865_v20  ;;  %1737 = vmatprep.subr.bf16.mxu0 %v1871_v19 }
  0xf8   : > { %v364_v55 = vadd.f32 %v1636_v53, %v1464_v24  ;;  %1661 = vmatprep.mubr.bf16.mxu1 %v401_v51  ;;  %v391_v61 = vmax.f32 %v353_v54, 0.0 }
  0xf9   : > { %v355_v57 = vpop.f32.mrf.mxu0  ;;  %1662 = vmatmul.mubr.bf16.gmra.mxu1 %v402_v52 }
  0xfa   : > { %v356_v58 = vadd.f32 %v1464_v24, %v355_v57  ;;  %v394_v59 = vmax.f32 %v364_v55, 0.0  ;;  %1710 = vmatpush3.bf16.msra.mxu1 %v1865_v20  ;;  %v1872_v20 = vld [vmem:[#allocation2 + $0x130] sm:$0xff]  }
  0xfb   : > { %v1639_v60 = vpop.f32.mrf.mxu0  ;;  %1711 = vmatprep.subr.bf16.mxu1 %v1866_v21 }
  0xfc   : > { %v392_v62 = vmax.f32 %v356_v58, 0.0  ;;  %v404_v2 = vpack.c.bf16 %v394_v59, %v393_v63  ;;  %v377_v6 = vadd.f32 %v1639_v60, %v1464_v24 }
  0xfd   : > { %v368_v0 = vpop.f32.mrf.mxu0 }
  0xfe   : > { %v403_v1 = vpack.c.bf16 %v392_v62, %v391_v61  ;;  %v369_v4 = vadd.f32 %v1464_v24, %v368_v0  ;;  %v397_v12 = vmax.f32 %v377_v6, 0.0  ;;  %1712 = vmatpush3.bf16.msra.mxu1 %v1866_v21  ;;  %v1873_v21 = vld [vmem:[#allocation2 + $0x128] sm:$0xff]  }
  0xff   : > { %v1640_v3 = vpop.f32.mrf.mxu0  ;;  %1713 = vmatprep.subr.bf16.mxu1 %v1867_v22 }
 0x100   : > { %v380_v5 = vadd.f32 %v1640_v3, %v1464_v24  ;;  %1665 = vmatprep.mubr.bf16.mxu1 %v403_v1  ;;  %v395_v10 = vmax.f32 %v369_v4, 0.0 }
 0x101   : > { %v371_v7 = vpop.f32.mrf.mxu0  ;;  %1666 = vmatmul.mubr.bf16.gmra.mxu1 %v404_v2 }
 0x102   : > { %v372_v8 = vadd.f32 %v1464_v24, %v371_v7  ;;  %v398_v9 = vmax.f32 %v380_v5, 0.0  ;;  %1714 = vmatpush3.bf16.msra.mxu1 %v1867_v22  ;;  %v1874_v22 = vld [vmem:[#allocation2 + $0x120] sm:$0xff]  }
 0x103   : > { %1715 = vmatprep.subr.bf16.mxu1 %v1868_v16 }
 0x104   : > { %v396_v11 = vmax.f32 %v372_v8, 0.0  ;;  %v406_v14 = vpack.c.bf16 %v398_v9, %v397_v12 }
 0x106   : > { %v405_v13 = vpack.c.bf16 %v396_v11, %v395_v10  ;;  %1716 = vmatpush3.bf16.msra.mxu1 %v1868_v16 }
 0x107   : > { %1717 = vmatprep.subr.bf16.mxu1 %v1869_v17 }
 0x108   : > { %1669 = vmatprep.mubr.bf16.mxu1 %v405_v13 }
 0x109   : > { %1670 = vmatmul.mubr.bf16.gmra.mxu1 %v406_v14 }
 0x10a   : > { %1718 = vmatpush3.bf16.msra.mxu1 %v1869_v17  ;;  %v1876_v17 = vld [vmem:[#allocation2 + $0x110] sm:$0xff]  }
 0x10b   : > { %1719 = vmatprep.subr.bf16.mxu1 %v1870_v18 }
 0x10e   : > { %1720 = vmatpush3.bf16.msra.mxu1 %v1870_v18  ;;  %v1877_v18 = vld [vmem:[#allocation2 + $0x108] sm:$0xff]  }
 0x1b1   : > { %v1659_v23 = vpop.f32.mrf.mxu1 }
 0x1b2   : > { %v523_v29 = vadd.f32 %v1659_v23, %v1483_v25  ;;  %v1875_v23 = vld [vmem:[#allocation2 + $0x118] sm:$0xff]  }
 0x1b3   : > { %v514_v24 = vpop.f32.mrf.mxu1 }
 0x1b4   : > { %v515_v27 = vadd.f32 %v1483_v25, %v514_v24  ;;  %v579_v36 = vmax.f32 %v523_v29, 0.0 }
 0x1b5   : > { %v1660_v26 = vpop.f32.mrf.mxu1 }
 0x1b6   : > { %v526_v28 = vadd.f32 %v1660_v26, %v1483_v25  ;;  %v577_v34 = vmax.f32 %v515_v27, 0.0  ;;  %v1493_v26 = vld [vmem:[%s2086_s2 + $0x2] ss:$0 sm:$0xff] }
 0x1b7   : > { %v517_v30 = vpop.f32.mrf.mxu1 }
 0x1b8   : > { %v518_v31 = vadd.f32 %v1483_v25, %v517_v30  ;;  %v580_v32 = vmax.f32 %v526_v28, 0.0 }
 0x1b9   : > { %v1663_v33 = vpop.f32.mrf.mxu1 }
 0x1ba   : > { %v578_v35 = vmax.f32 %v518_v31, 0.0  ;;  %v594_v39 = vpack.c.bf16 %v580_v32, %v579_v36  ;;  %v539_v43 = vadd.f32 %v1663_v33, %v1483_v25 }
 0x1bb   : > { %v530_v37 = vpop.f32.mrf.mxu1 }
 0x1bc   : > { %v593_v38 = vpack.c.bf16 %v578_v35, %v577_v34  ;;  %v531_v41 = vadd.f32 %v1483_v25, %v530_v37  ;;  %v583_v50 = vmax.f32 %v539_v43, 0.0 }
 0x1bd   : > { %v1664_v40 = vpop.f32.mrf.mxu1 }
 0x1be   : > { %v542_v42 = vadd.f32 %v1664_v40, %v1483_v25  ;;  %1689 = vmatprep.mubr.bf16.mxu0 %v593_v38  ;;  %v581_v48 = vmax.f32 %v531_v41, 0.0 }
 0x1bf   : > { %v533_v44 = vpop.f32.mrf.mxu1  ;;  %1690 = vmatmul.mubr.bf16.vlgmr.msra.gmra.mxu0 %v594_v39 }
 0x1c0   : > { %v534_v45 = vadd.f32 %v1483_v25, %v533_v44  ;;  %v584_v46 = vmax.f32 %v542_v42, 0.0  ;;  %1738 = vmatpush3.bf16.msra.mxu0 %v1871_v19  ;;  %v1878_v19 = vld [vmem:[#allocation2 + $0x100] sm:$0xff]  }
 0x1c1   : > { %v1667_v47 = vpop.f32.mrf.mxu1  ;;  %1739 = vmatprep.subr.bf16.mxu0 %v1872_v20 }
 0x1c2   : > { %v582_v49 = vmax.f32 %v534_v45, 0.0  ;;  %v596_v53 = vpack.c.bf16 %v584_v46, %v583_v50  ;;  %v555_v57 = vadd.f32 %v1667_v47, %v1483_v25 }
 0x1c3   : > { %v546_v51 = vpop.f32.mrf.mxu1 }
 0x1c4   : > { %v595_v52 = vpack.c.bf16 %v582_v49, %v581_v48  ;;  %v547_v55 = vadd.f32 %v1483_v25, %v546_v51  ;;  %v587_v0 = vmax.f32 %v555_v57, 0.0  ;;  %1740 = vmatpush3.bf16.msra.mxu0 %v1872_v20  ;;  %v1879_v20 = vld [vmem:[#allocation2 + $0x178] sm:$0xff]  }
 0x1c5   : > { %v1668_v54 = vpop.f32.mrf.mxu1  ;;  %1741 = vmatprep.subr.bf16.mxu0 %v1873_v21  ;;  %1801 = vmatprep.subr.bf16.mxu1 %v1879_v20 }
 0x1c6   : > { %v558_v56 = vadd.f32 %v1668_v54, %v1483_v25  ;;  %1693 = vmatprep.mubr.bf16.mxu0 %v595_v52  ;;  %v585_v62 = vmax.f32 %v547_v55, 0.0 }
 0x1c7   : > { %v549_v58 = vpop.f32.mrf.mxu1  ;;  %1694 = vmatmul.mubr.bf16.gmra.mxu0 %v596_v53 }
 0x1c8   : > { %v550_v59 = vadd.f32 %v1483_v25, %v549_v58  ;;  %v588_v60 = vmax.f32 %v558_v56, 0.0  ;;  %1742 = vmatpush3.bf16.msra.mxu0 %v1873_v21  ;;  %v1880_v21 = vld [vmem:[#allocation2 + $0x170] sm:$0xff]  }
 0x1c9   : > { %v1671_v61 = vpop.f32.mrf.mxu1  ;;  %1743 = vmatprep.subr.bf16.mxu0 %v1874_v22 }
 0x1ca   : > { %v586_v63 = vmax.f32 %v550_v59, 0.0  ;;  %v598_v3 = vpack.c.bf16 %v588_v60, %v587_v0  ;;  %v571_v7 = vadd.f32 %v1671_v61, %v1483_v25 }
 0x1cb   : > { %v562_v1 = vpop.f32.mrf.mxu1 }
 0x1cc   : > { %v597_v2 = vpack.c.bf16 %v586_v63, %v585_v62  ;;  %v563_v5 = vadd.f32 %v1483_v25, %v562_v1  ;;  %v591_v13 = vmax.f32 %v571_v7, 0.0  ;;  %1744 = vmatpush3.bf16.msra.mxu0 %v1874_v22  ;;  %v1881_v22 = vld [vmem:[#allocation2 + $0x168] sm:$0xff]  }
 0x1cd   : > { %v1672_v4 = vpop.f32.mrf.mxu1  ;;  %1745 = vmatprep.subr.bf16.mxu0 %v1875_v23 }
 0x1ce   : > { %v574_v6 = vadd.f32 %v1672_v4, %v1483_v25  ;;  %1697 = vmatprep.mubr.bf16.mxu0 %v597_v2  ;;  %v589_v11 = vmax.f32 %v563_v5, 0.0 }
 0x1cf   : > { %v565_v8 = vpop.f32.mrf.mxu1  ;;  %1698 = vmatmul.mubr.bf16.gmra.mxu0 %v598_v3 }
 0x1d0   : > { %v566_v9 = vadd.f32 %v1483_v25, %v565_v8  ;;  %v592_v10 = vmax.f32 %v574_v6, 0.0  ;;  %1746 = vmatpush3.bf16.msra.mxu0 %v1875_v23  ;;  %v1882_v23 = vld [vmem:[#allocation2 + $0x160] sm:$0xff]  }
 0x1d1   : > { %1747 = vmatprep.subr.bf16.mxu0 %v1876_v17 }
 0x1d2   : > { %v590_v12 = vmax.f32 %v566_v9, 0.0  ;;  %v600_v15 = vpack.c.bf16 %v592_v10, %v591_v13 }
 0x1d4   : > { %v599_v14 = vpack.c.bf16 %v590_v12, %v589_v11  ;;  %1748 = vmatpush3.bf16.msra.mxu0 %v1876_v17 }
 0x1d5   : > { %1749 = vmatprep.subr.bf16.mxu0 %v1877_v18 }
 0x1d6   : > { %1701 = vmatprep.mubr.bf16.mxu0 %v599_v14 }
 0x1d7   : > { %1702 = vmatmul.mubr.bf16.gmra.mxu0 %v600_v15 }
 0x1d8   : > { %1750 = vmatpush3.bf16.msra.mxu0 %v1877_v18  ;;  %v1884_v18 = vld [vmem:[#allocation2 + $0x150] sm:$0xff]  }
 0x1d9   : > { %1751 = vmatprep.subr.bf16.mxu0 %v1878_v19 }
 0x1dc   : > { %1752 = vmatpush3.bf16.msra.mxu0 %v1878_v19  ;;  %v1885_v19 = vld [vmem:[#allocation2 + $0x148] sm:$0xff]  }
 0x1dd   : > { %1769 = vmatprep.subr.bf16.mxu0 %v1879_v20 }
 0x27f   : > { %v1691_v24 = vpop.f32.mrf.mxu0 }
 0x280   : > { %v717_v30 = vadd.f32 %v1691_v24, %v1493_v26  ;;  %v2010_v24 = vld [vmem:[#allocation2 + $0x158] sm:$0xff]  }
 0x281   : > { %v708_v25 = vpop.f32.mrf.mxu0 }
 0x282   : > { %v709_v28 = vadd.f32 %v1493_v26, %v708_v25  ;;  %v773_v37 = vmax.f32 %v717_v30, 0.0 }
 0x283   : > { %v1692_v27 = vpop.f32.mrf.mxu0 }
 0x284   : > { %v720_v29 = vadd.f32 %v1692_v27, %v1493_v26  ;;  %v771_v35 = vmax.f32 %v709_v28, 0.0  ;;  %v1503_v27 = vld [vmem:[%s2086_s2 + $0x3] ss:$0 sm:$0xff] }
 0x285   : > { %v711_v31 = vpop.f32.mrf.mxu0 }
 0x286   : > { %v712_v32 = vadd.f32 %v1493_v26, %v711_v31  ;;  %v774_v33 = vmax.f32 %v720_v29, 0.0 }
 0x287   : > { %v1695_v34 = vpop.f32.mrf.mxu0 }
 0x288   : > { %v772_v36 = vmax.f32 %v712_v32, 0.0  ;;  %v788_v40 = vpack.c.bf16 %v774_v33, %v773_v37  ;;  %v733_v44 = vadd.f32 %v1695_v34, %v1493_v26 }
 0x289   : > { %v724_v38 = vpop.f32.mrf.mxu0 }
 0x28a   : > { %v787_v39 = vpack.c.bf16 %v772_v36, %v771_v35  ;;  %v725_v42 = vadd.f32 %v1493_v26, %v724_v38  ;;  %v777_v51 = vmax.f32 %v733_v44, 0.0 }
 0x28b   : > { %v1696_v41 = vpop.f32.mrf.mxu0 }
 0x28c   : > { %v736_v43 = vadd.f32 %v1696_v41, %v1493_v26  ;;  %1721 = vmatprep.mubr.bf16.mxu1 %v787_v39  ;;  %v775_v49 = vmax.f32 %v725_v42, 0.0 }
 0x28d   : > { %v727_v45 = vpop.f32.mrf.mxu0  ;;  %1722 = vmatmul.mubr.bf16.vlgmr.msra.gmra.mxu1 %v788_v40 }
 0x28e   : > { %v728_v46 = vadd.f32 %v1493_v26, %v727_v45  ;;  %v778_v47 = vmax.f32 %v736_v43, 0.0  ;;  %1809 = vmatpush3.bf16.msra.mxu1 %v1879_v20 }
 0x28f   : > { %v1699_v48 = vpop.f32.mrf.mxu0  ;;  %1802 = vmatprep.subr.bf16.mxu1 %v1880_v21 }
 0x290   : > { %v776_v50 = vmax.f32 %v728_v46, 0.0  ;;  %v790_v54 = vpack.c.bf16 %v778_v47, %v777_v51  ;;  %v749_v58 = vadd.f32 %v1699_v48, %v1493_v26 }
 0x291   : > { %v740_v52 = vpop.f32.mrf.mxu0 }
 0x292   : > { %v789_v53 = vpack.c.bf16 %v776_v50, %v775_v49  ;;  %v741_v56 = vadd.f32 %v1493_v26, %v740_v52  ;;  %v781_v1 = vmax.f32 %v749_v58, 0.0  ;;  %1810 = vmatpush3.bf16.msra.mxu1 %v1880_v21 }
 0x293   : > { %v1700_v55 = vpop.f32.mrf.mxu0  ;;  %1803 = vmatprep.subr.bf16.mxu1 %v1881_v22 }
 0x294   : > { %v752_v57 = vadd.f32 %v1700_v55, %v1493_v26  ;;  %1725 = vmatprep.mubr.bf16.mxu1 %v789_v53  ;;  %v779_v63 = vmax.f32 %v741_v56, 0.0 }
 0x295   : > { %v743_v59 = vpop.f32.mrf.mxu0  ;;  %1726 = vmatmul.mubr.bf16.gmra.mxu1 %v790_v54 }
 0x296   : > { %v744_v60 = vadd.f32 %v1493_v26, %v743_v59  ;;  %v782_v61 = vmax.f32 %v752_v57, 0.0  ;;  %1811 = vmatpush3.bf16.msra.mxu1 %v1881_v22 }
 0x297   : > { %v1703_v62 = vpop.f32.mrf.mxu0  ;;  %1804 = vmatprep.subr.bf16.mxu1 %v1882_v23 }
 0x298   : > { %v780_v0 = vmax.f32 %v744_v60, 0.0  ;;  %v792_v4 = vpack.c.bf16 %v782_v61, %v781_v1  ;;  %v765_v8 = vadd.f32 %v1703_v62, %v1493_v26 }
 0x299   : > { %v756_v2 = vpop.f32.mrf.mxu0 }
 0x29a   : > { %v791_v3 = vpack.c.bf16 %v780_v0, %v779_v63  ;;  %v757_v6 = vadd.f32 %v1493_v26, %v756_v2  ;;  %v785_v14 = vmax.f32 %v765_v8, 0.0  ;;  %1812 = vmatpush3.bf16.msra.mxu1 %v1882_v23 }
 0x29b   : > { %v1704_v5 = vpop.f32.mrf.mxu0  ;;  %1805 = vmatprep.subr.bf16.mxu1 %v2010_v24 }
 0x29c   : > { %v768_v7 = vadd.f32 %v1704_v5, %v1493_v26  ;;  %1729 = vmatprep.mubr.bf16.mxu1 %v791_v3  ;;  %v783_v12 = vmax.f32 %v757_v6, 0.0 }
 0x29d   : > { %v759_v9 = vpop.f32.mrf.mxu0  ;;  %1730 = vmatmul.mubr.bf16.gmra.mxu1 %v792_v4 }
 0x29e   : > { %v760_v10 = vadd.f32 %v1493_v26, %v759_v9  ;;  %v786_v11 = vmax.f32 %v768_v7, 0.0  ;;  %1813 = vmatpush3.bf16.msra.mxu1 %v2010_v24 }
 0x29f   : > { %1806 = vmatprep.subr.bf16.mxu1 %v1884_v18 }
 0x2a0   : > { %v784_v13 = vmax.f32 %v760_v10, 0.0  ;;  %v794_v16 = vpack.c.bf16 %v786_v11, %v785_v14 }
 0x2a2   : > { %v793_v15 = vpack.c.bf16 %v784_v13, %v783_v12  ;;  %1814 = vmatpush3.bf16.msra.mxu1 %v1884_v18 }
 0x2a3   : > { %1807 = vmatprep.subr.bf16.mxu1 %v1885_v19 }
 0x2a4   : > { %1733 = vmatprep.mubr.bf16.mxu1 %v793_v15 }
 0x2a5   : > { %1734 = vmatmul.mubr.bf16.gmra.mxu1 %v794_v16 }
 0x2a6   : > { %1815 = vmatpush3.bf16.msra.mxu1 %v1885_v19 }
 0x34d   : > { %v1723_v25 = vpop.f32.mrf.mxu1 }
 0x34e   : > { %v911_v31 = vadd.f32 %v1723_v25, %v1503_v27 }
 0x34f   : > { %v902_v26 = vpop.f32.mrf.mxu1 }
 0x350   : > { %v903_v29 = vadd.f32 %v1503_v27, %v902_v26  ;;  %v967_v38 = vmax.f32 %v911_v31, 0.0 }
 0x351   : > { %v1724_v28 = vpop.f32.mrf.mxu1 }
 0x352   : > { %v914_v30 = vadd.f32 %v1724_v28, %v1503_v27  ;;  %v965_v36 = vmax.f32 %v903_v29, 0.0 }
 0x353   : > { %v905_v32 = vpop.f32.mrf.mxu1 }
 0x354   : > { %v906_v33 = vadd.f32 %v1503_v27, %v905_v32  ;;  %v968_v34 = vmax.f32 %v914_v30, 0.0 }
 0x355   : > { %v1727_v35 = vpop.f32.mrf.mxu1 }
 0x356   : > { %v966_v37 = vmax.f32 %v906_v33, 0.0  ;;  %v982_v41 = vpack.c.bf16 %v968_v34, %v967_v38  ;;  %v927_v45 = vadd.f32 %v1727_v35, %v1503_v27 }
 0x357   : > { %v918_v39 = vpop.f32.mrf.mxu1 }
 0x358   : > { %v981_v40 = vpack.c.bf16 %v966_v37, %v965_v36  ;;  %v919_v43 = vadd.f32 %v1503_v27, %v918_v39  ;;  %v971_v52 = vmax.f32 %v927_v45, 0.0 }
 0x359   : > { %v1728_v42 = vpop.f32.mrf.mxu1 }
 0x35a   : > { %v930_v44 = vadd.f32 %v1728_v42, %v1503_v27  ;;  %1753 = vmatprep.mubr.bf16.mxu0 %v981_v40  ;;  %v969_v50 = vmax.f32 %v919_v43, 0.0 }
 0x35b   : > { %v921_v46 = vpop.f32.mrf.mxu1  ;;  %1754 = vmatmul.mubr.bf16.vlgmr.msra.gmra.mxu0 %v982_v41 }
 0x35c   : > { %v922_v47 = vadd.f32 %v1503_v27, %v921_v46  ;;  %1770 = vmatpush3.bf16.msra.mxu0 %v1879_v20  ;;  %v972_v48 = vmax.f32 %v930_v44, 0.0  ;;  %v1886_v20 = vld [vmem:[#allocation2 + $0x140] sm:$0xff]  }
 0x35d   : > { %v1731_v49 = vpop.f32.mrf.mxu1  ;;  %1771 = vmatprep.subr.bf16.mxu0 %v1880_v21  ;;  %1808 = vmatprep.subr.bf16.mxu1 %v1886_v20 }
 0x35e   : > { %v970_v51 = vmax.f32 %v922_v47, 0.0  ;;  %v984_v55 = vpack.c.bf16 %v972_v48, %v971_v52  ;;  %v943_v59 = vadd.f32 %v1731_v49, %v1503_v27  ;;  %1816 = vmatpush3.bf16.msra.mxu1 %v1886_v20 }
 0x35f   : > { %v934_v53 = vpop.f32.mrf.mxu1 }
 0x360   : > { %v983_v54 = vpack.c.bf16 %v970_v51, %v969_v50  ;;  %1772 = vmatpush3.bf16.msra.mxu0 %v1880_v21  ;;  %v935_v57 = vadd.f32 %v1503_v27, %v934_v53  ;;  %v975_v2 = vmax.f32 %v943_v59, 0.0 }
 0x361   : > { %v1732_v56 = vpop.f32.mrf.mxu1  ;;  %1773 = vmatprep.subr.bf16.mxu0 %v1881_v22 }
 0x362   : > { %v946_v58 = vadd.f32 %v1732_v56, %v1503_v27  ;;  %1757 = vmatprep.mubr.bf16.mxu0 %v983_v54  ;;  %v973_v0 = vmax.f32 %v935_v57, 0.0 }
 0x363   : > { %v937_v60 = vpop.f32.mrf.mxu1  ;;  %1758 = vmatmul.mubr.bf16.gmra.mxu0 %v984_v55 }
 0x364   : > { %v938_v61 = vadd.f32 %v1503_v27, %v937_v60  ;;  %1774 = vmatpush3.bf16.msra.mxu0 %v1881_v22  ;;  %v976_v62 = vmax.f32 %v946_v58, 0.0 }
 0x365   : > { %v1735_v63 = vpop.f32.mrf.mxu1  ;;  %1775 = vmatprep.subr.bf16.mxu0 %v1882_v23 }
 0x366   : > { %v974_v1 = vmax.f32 %v938_v61, 0.0  ;;  %v986_v5 = vpack.c.bf16 %v976_v62, %v975_v2  ;;  %v959_v9 = vadd.f32 %v1735_v63, %v1503_v27 }
 0x367   : > { %v950_v3 = vpop.f32.mrf.mxu1 }
 0x368   : > { %v985_v4 = vpack.c.bf16 %v974_v1, %v973_v0  ;;  %1776 = vmatpush3.bf16.msra.mxu0 %v1882_v23  ;;  %v951_v7 = vadd.f32 %v1503_v27, %v950_v3  ;;  %v979_v15 = vmax.f32 %v959_v9, 0.0  ;;  %v1513_v23 = vld [vmem:[%s2086_s2 + $0x4] ss:$0 sm:$0xff] }
 0x369   : > { %v1736_v6 = vpop.f32.mrf.mxu1  ;;  %1777 = vmatprep.subr.bf16.mxu0 %v2010_v24 }
 0x36a   : > { %v962_v8 = vadd.f32 %v1736_v6, %v1503_v27  ;;  %1761 = vmatprep.mubr.bf16.mxu0 %v985_v4  ;;  %v977_v13 = vmax.f32 %v951_v7, 0.0 }
 0x36b   : > { %v953_v10 = vpop.f32.mrf.mxu1  ;;  %1762 = vmatmul.mubr.bf16.gmra.mxu0 %v986_v5 }
 0x36c   : > { %v954_v11 = vadd.f32 %v1503_v27, %v953_v10  ;;  %1778 = vmatpush3.bf16.msra.mxu0 %v2010_v24  ;;  %v980_v12 = vmax.f32 %v962_v8, 0.0 }
 0x36d   : > { %1779 = vmatprep.subr.bf16.mxu0 %v1884_v18 }
 0x36e   : > { %v978_v14 = vmax.f32 %v954_v11, 0.0  ;;  %v988_v17 = vpack.c.bf16 %v980_v12, %v979_v15 }
 0x370   : > { %v987_v16 = vpack.c.bf16 %v978_v14, %v977_v13  ;;  %1780 = vmatpush3.bf16.msra.mxu0 %v1884_v18  ;;  %v2025_v14 = vld [vmem:[%s2086_s2 + $0x5] ss:$0 sm:$0xff] }
 0x371   : > { %1781 = vmatprep.subr.bf16.mxu0 %v1885_v19 }
 0x372   : > { %1765 = vmatprep.mubr.bf16.mxu0 %v987_v16 }
 0x373   : > { %1766 = vmatmul.mubr.bf16.gmra.mxu0 %v988_v17 }
 0x374   : > { %1782 = vmatpush3.bf16.msra.mxu0 %v1885_v19 }
 0x375   : > { %1783 = vmatprep.subr.bf16.mxu0 %v1886_v20 }
 0x378   : > { %1784 = vmatpush3.bf16.msra.mxu0 %v1886_v20 }
 0x41b   : > { %v1755_v21 = vpop.f32.mrf.mxu0 }
 0x41c   : > { %v1105_v27 = vadd.f32 %v1755_v21, %v1513_v23 }
 0x41d   : > { %v1096_v22 = vpop.f32.mrf.mxu0 }
 0x41e   : > { %v1097_v25 = vadd.f32 %v1513_v23, %v1096_v22  ;;  %v1161_v34 = vmax.f32 %v1105_v27, 0.0 }
 0x41f   : > { %v1756_v24 = vpop.f32.mrf.mxu0 }
 0x420   : > { %v1108_v26 = vadd.f32 %v1756_v24, %v1513_v23  ;;  %v1159_v32 = vmax.f32 %v1097_v25, 0.0 }
 0x421   : > { %v1099_v28 = vpop.f32.mrf.mxu0 }
 0x422   : > { %v1100_v29 = vadd.f32 %v1513_v23, %v1099_v28  ;;  %v1162_v30 = vmax.f32 %v1108_v26, 0.0 }
 0x423   : > { %v1759_v31 = vpop.f32.mrf.mxu0 }
 0x424   : > { %v1160_v33 = vmax.f32 %v1100_v29, 0.0  ;;  %v1176_v37 = vpack.c.bf16 %v1162_v30, %v1161_v34  ;;  %v1121_v41 = vadd.f32 %v1759_v31, %v1513_v23 }
 0x425   : > { %v1112_v35 = vpop.f32.mrf.mxu0 }
 0x426   : > { %v1175_v36 = vpack.c.bf16 %v1160_v33, %v1159_v32  ;;  %v1113_v39 = vadd.f32 %v1513_v23, %v1112_v35  ;;  %v1165_v48 = vmax.f32 %v1121_v41, 0.0 }
 0x427   : > { %v1760_v38 = vpop.f32.mrf.mxu0 }
 0x428   : > { %v1124_v40 = vadd.f32 %v1760_v38, %v1513_v23  ;;  %1785 = vmatprep.mubr.bf16.mxu0 %v1175_v36  ;;  %v1163_v46 = vmax.f32 %v1113_v39, 0.0 }
 0x429   : > { %v1115_v42 = vpop.f32.mrf.mxu0  ;;  %1786 = vmatmul.mubr.bf16.vlgmr.msra.gmra.mxu0 %v1176_v37 }
 0x42a   : > { %v1116_v43 = vadd.f32 %v1513_v23, %v1115_v42  ;;  %v1166_v44 = vmax.f32 %v1124_v40, 0.0 }
 0x42b   : > { %v1763_v45 = vpop.f32.mrf.mxu0 }
 0x42c   : > { %v1164_v47 = vmax.f32 %v1116_v43, 0.0  ;;  %v1178_v51 = vpack.c.bf16 %v1166_v44, %v1165_v48  ;;  %v1137_v55 = vadd.f32 %v1763_v45, %v1513_v23 }
 0x42d   : > { %v1128_v49 = vpop.f32.mrf.mxu0 }
 0x42e   : > { %v1177_v50 = vpack.c.bf16 %v1164_v47, %v1163_v46  ;;  %v1129_v53 = vadd.f32 %v1513_v23, %v1128_v49  ;;  %v1169_v62 = vmax.f32 %v1137_v55, 0.0 }
 0x42f   : > { %v1764_v52 = vpop.f32.mrf.mxu0 }
 0x430   : > { %v1140_v54 = vadd.f32 %v1764_v52, %v1513_v23  ;;  %1789 = vmatprep.mubr.bf16.mxu1 %v1177_v50  ;;  %v1167_v60 = vmax.f32 %v1129_v53, 0.0 }
 0x431   : > { %v1131_v56 = vpop.f32.mrf.mxu0  ;;  %1790 = vmatmul.mubr.bf16.vlgmr.msra.gmra.mxu1 %v1178_v51 }
 0x432   : > { %v1132_v57 = vadd.f32 %v1513_v23, %v1131_v56  ;;  %v1170_v58 = vmax.f32 %v1140_v54, 0.0 }
 0x433   : > { %v1767_v59 = vpop.f32.mrf.mxu0 }
 0x434   : > { %v1168_v61 = vmax.f32 %v1132_v57, 0.0  ;;  %v1180_v1 = vpack.c.bf16 %v1170_v58, %v1169_v62  ;;  %v1153_v5 = vadd.f32 %v1767_v59, %v1513_v23 }
 0x435   : > { %v1144_v63 = vpop.f32.mrf.mxu0 }
 0x436   : > { %v1179_v0 = vpack.c.bf16 %v1168_v61, %v1167_v60  ;;  %v1145_v3 = vadd.f32 %v1513_v23, %v1144_v63  ;;  %v1173_v11 = vmax.f32 %v1153_v5, 0.0 }
 0x437   : > { %v1768_v2 = vpop.f32.mrf.mxu0 }
 0x438   : > { %v1156_v4 = vadd.f32 %v1768_v2, %v1513_v23  ;;  %1793 = vmatprep.mubr.bf16.mxu1 %v1179_v0  ;;  %v1171_v9 = vmax.f32 %v1145_v3, 0.0 }
 0x439   : > { %v1147_v6 = vpop.f32.mrf.mxu0  ;;  %1794 = vmatmul.mubr.bf16.gmra.mxu1 %v1180_v1 }
 0x43a   : > { %v1148_v7 = vadd.f32 %v1513_v23, %v1147_v6  ;;  %v1174_v8 = vmax.f32 %v1156_v4, 0.0 }
 0x43c   : > { %v1172_v10 = vmax.f32 %v1148_v7, 0.0  ;;  %v1182_v13 = vpack.c.bf16 %v1174_v8, %v1173_v11 }
 0x43e   : > { %v1181_v12 = vpack.c.bf16 %v1172_v10, %v1171_v9 }
 0x440   : > { %1797 = vmatprep.mubr.bf16.mxu1 %v1181_v12 }
 0x441   : > { %1798 = vmatmul.mubr.bf16.gmra.mxu1 %v1182_v13 }
 0x4e9   : > { %v1787_v15 = vpop.f32.mrf.mxu0 }
 0x4ea   : > { %v1299_v16 = vadd.f32 %v1787_v15, %v2025_v14 }
 0x4eb   : > { %v1290_v17 = vpop.f32.mrf.mxu0 }
 0x4ec   : > { %v1355_v18 = vmax.f32 %v1299_v16, 0.0  ;;  %v1291_v19 = vadd.f32 %v2025_v14, %v1290_v17 }
 0x4ed   : > { %v1788_v20 = vpop.f32.mrf.mxu0 }
 0x4ee   : > { %1371 = vst.msk [vmem:[%s2032_s17 + $0x10] sm:$0xff] %vm261_vm0, %v1355_v18  ;;  %v1353_v21 = vmax.f32 %v1291_v19, 0.0  ;;  %v1302_v22 = vadd.f32 %v1788_v20, %v2025_v14 }
 0x4ef   : > { %v1293_v23 = vpop.f32.mrf.mxu0 }
 0x4f0   : > { %1369 = vst.msk [vmem:[%s2032_s17] sm:$0xff] %vm261_vm0, %v1353_v21  ;;  %v1356_v24 = vmax.f32 %v1302_v22, 0.0  ;;  %v1294_v25 = vadd.f32 %v2025_v14, %v1293_v23 }
 0x4f1   : > { %v1791_v26 = vpop.f32.mrf.mxu1 }
 0x4f2   : > { %1372 = vst.msk [vmem:[%s2032_s17 + $0x18] sm:$0xff] %vm261_vm0, %v1356_v24  ;;  %v1354_v27 = vmax.f32 %v1294_v25, 0.0  ;;  %v1315_v28 = vadd.f32 %v1791_v26, %v2025_v14 }
 0x4f3   : > { %v1306_v29 = vpop.f32.mrf.mxu1 }
 0x4f4   : > { %1370 = vst.msk [vmem:[%s2032_s17 + $0x8] sm:$0xff] %vm261_vm0, %v1354_v27  ;;  %v1359_v30 = vmax.f32 %v1315_v28, 0.0  ;;  %v1307_v31 = vadd.f32 %v2025_v14, %v1306_v29 }
 0x4f5   : > { %v1792_v32 = vpop.f32.mrf.mxu1 }
 0x4f6   : > { %1375 = vst.msk [vmem:[%s2032_s17 + $0x30] sm:$0xff] %vm261_vm0, %v1359_v30  ;;  %v1357_v33 = vmax.f32 %v1307_v31, 0.0  ;;  %v1318_v34 = vadd.f32 %v1792_v32, %v2025_v14 }
 0x4f7   : > { %v1309_v35 = vpop.f32.mrf.mxu1 }
 0x4f8   : > { %1373 = vst.msk [vmem:[%s2032_s17 + $0x20] sm:$0xff] %vm261_vm0, %v1357_v33  ;;  %v1360_v36 = vmax.f32 %v1318_v34, 0.0  ;;  %v1310_v37 = vadd.f32 %v2025_v14, %v1309_v35 }
 0x4f9   : > { %v1795_v38 = vpop.f32.mrf.mxu1 }
 0x4fa   : > { %1376 = vst.msk [vmem:[%s2032_s17 + $0x38] sm:$0xff] %vm261_vm0, %v1360_v36  ;;  %v1358_v39 = vmax.f32 %v1310_v37, 0.0  ;;  %v1331_v40 = vadd.f32 %v1795_v38, %v2025_v14 }
 0x4fb   : > { %v1322_v41 = vpop.f32.mrf.mxu1 }
 0x4fc   : > { %1374 = vst.msk [vmem:[%s2032_s17 + $0x28] sm:$0xff] %vm261_vm0, %v1358_v39  ;;  %v1363_v42 = vmax.f32 %v1331_v40, 0.0  ;;  %v1323_v43 = vadd.f32 %v2025_v14, %v1322_v41 }
 0x4fd   : > { %v1796_v44 = vpop.f32.mrf.mxu1 }
 0x4fe   : > { %1379 = vst.msk [vmem:[%s2032_s17 + $0x50] sm:$0xff] %vm261_vm0, %v1363_v42  ;;  %v1361_v45 = vmax.f32 %v1323_v43, 0.0  ;;  %v1334_v46 = vadd.f32 %v1796_v44, %v2025_v14 }
 0x4ff   : > { %v1325_v47 = vpop.f32.mrf.mxu1 }
 0x500   : > { %1377 = vst.msk [vmem:[%s2032_s17 + $0x40] sm:$0xff] %vm261_vm0, %v1361_v45  ;;  %v1364_v48 = vmax.f32 %v1334_v46, 0.0  ;;  %v1326_v49 = vadd.f32 %v2025_v14, %v1325_v47 }
 0x501   : > { %v1799_v50 = vpop.f32.mrf.mxu1 }
 0x502   : > { %1380 = vst.msk [vmem:[%s2032_s17 + $0x58] sm:$0xff] %vm261_vm0, %v1364_v48  ;;  %v1362_v51 = vmax.f32 %v1326_v49, 0.0  ;;  %v1347_v52 = vadd.f32 %v1799_v50, %v2025_v14 }
 0x503   : > { %v1338_v53 = vpop.f32.mrf.mxu1 }
 0x504   : > { %1378 = vst.msk [vmem:[%s2032_s17 + $0x48] sm:$0xff] %vm261_vm0, %v1362_v51  ;;  %v1367_v54 = vmax.f32 %v1347_v52, 0.0  ;;  %v1339_v55 = vadd.f32 %v2025_v14, %v1338_v53 }
 0x505   : > { %v1800_v56 = vpop.f32.mrf.mxu1 }
 0x506   : > { %1383 = vst.msk [vmem:[%s2032_s17 + $0x70] sm:$0xff] %vm261_vm0, %v1367_v54  ;;  %v1365_v57 = vmax.f32 %v1339_v55, 0.0  ;;  %v1350_v58 = vadd.f32 %v1800_v56, %v2025_v14 }
 0x507   : > { %v1341_v59 = vpop.f32.mrf.mxu1 }
 0x508   : > { %1381 = vst.msk [vmem:[%s2032_s17 + $0x60] sm:$0xff] %vm261_vm0, %v1365_v57  ;;  %v1368_v60 = vmax.f32 %v1350_v58, 0.0  ;;  %v1342_v61 = vadd.f32 %v2025_v14, %v1341_v59 }
 0x50a   : > { %1384 = vst.msk [vmem:[%s2032_s17 + $0x78] sm:$0xff] %vm261_vm0, %v1368_v60  ;;  %v1366_v62 = vmax.f32 %v1342_v61, 0.0 }
 0x50c   : > { %1382 = vst.msk [vmem:[%s2032_s17 + $0x68] sm:$0xff] %vm261_vm0, %v1366_v62 }
 0x50d PF: > { %s14_s12 = sadd.s32 1, %s1923_s12  }
 0x50e   : > { %p11_p1 = scmp.ge.s32.totalorder %s14_s12, 4  }
 0x510   :  { %13 = sbr.rel (!%p11_p1) target bundleno = 1 (0x1), region = 77 }
 0x515   :  { %1407 = vsyncpa [#allocation3], 1 }
 0x516   :  { %1409 = vsyncpa [#allocation3 + $0x1], 1 }

</bundles_post_ra>
